<compile_context>
chip_gen: v6e
topology: v6e:2x2x1
jax: 0.10.0
libtpu: 0.0.40
codegen_flags: <defaults>
</compile_context>

<pallas_src>
import functools
import math

import jax
import jax.numpy as jnp
from jax import lax
from jax.experimental import pallas as pl
from jax.experimental.pallas import tpu as pltpu


# ------------------------- generation-aware config ------------------------- #

def _device_kind() -> str:
    try:
        return jax.devices()[0].device_kind.lower()
    except Exception:
        return ""


_KIND = _device_kind()
_IS_V7X = "v7" in _KIND
# v5e and older lack bf16 VPU/EUP: keep the f32 softmax path there.
_HAS_BF16_VPU = not any(t in _KIND for t in ("v2", "v3", "v4", "v5"))
# v7x has only 64 MiB physical VMEM per TC -> leave headroom; v5e/v6e have 128 MiB.
_VMEM_LIMIT_BYTES = (40 if _IS_V7X else 64) * 1024 * 1024


def _tile(dim, desired, align):
    """Largest tile <= desired that is a multiple of `align` and divides `dim`.

    Falls back to the full dimension (always a legal block shape) when the dim
    is small or has no aligned divisor.
    TODO(synk): non-divisible large dims degrade to one full-dim block instead
    of cdiv + masked tail blocks.
    """
    if dim <= desired:
        return dim
    t = (desired // align) * align
    while t >= align:
        if dim % t == 0:
            return t
        t -= align
    return dim


# ----------------------------- Pallas kernels ------------------------------ #

def _proj_heads_kernel(x_ref, *refs):
    """refs = (w_0..w_{n-1}, out_0..out_{n-1}).

    x_ref:  (1, tm, Din)           activations (bf16)
    w_t:    (H, Din, d)            per-head weights (bf16, scale pre-folded for Q)
    out_t:  (1, H, tm, d)          head-major projection output
    """
    n = len(refs) // 2
    x = x_ref[0]                                       # (tm, Din)
    for t in range(n):
        w_ref, o_ref = refs[t], refs[n + t]
        for h in range(w_ref.shape[0]):                # static unroll over heads
            y = jnp.dot(x, w_ref[h], preferred_element_type=jnp.float32)
            o_ref[0, h] = y.astype(o_ref.dtype)


def _flash_attn_kernel(q_ref, k_ref, v_ref, o_ref, m_sc, l_sc, acc_sc,
                       *, bf16_softmax):
    ki = pl.program_id(3)

    @pl.when(ki == 0)
    def _():
        m_sc[...] = jnp.full(m_sc.shape, -jnp.inf, jnp.float32)
        l_sc[...] = jnp.zeros(l_sc.shape, jnp.float32)
        acc_sc[...] = jnp.zeros(acc_sc.shape, jnp.float32)

    q = q_ref[0, 0]                                    # (tq, d); scale folded into W_q
    k = k_ref[0, 0]                                    # (tk, d)
    v = v_ref[0, 0]                                    # (tk, d)

    # q @ k^T without an explicit transpose: contract the last dims (MXU, f32 acc).
    s = lax.dot_general(q, k,
                        dimension_numbers=(((1,), (1,)), ((), ())),
                        preferred_element_type=jnp.float32)   # (tq, tk) f32

    m_prev = m_sc[...]                                         # (tq, 1)
    m_new = jnp.maximum(m_prev, jnp.max(s, axis=-1, keepdims=True))
    alpha = jnp.exp(m_prev - m_new)                            # (tq, 1) f32

    if bf16_softmax:
        # v6e/v7x: bf16 exp ~2x EUP throughput; m/l/acc state stays f32.
        p = jnp.exp((s - m_new).astype(jnp.bfloat16))          # (tq, tk) bf16
        p_sum = jnp.sum(p.astype(jnp.float32), axis=-1, keepdims=True)
        p_mm = p
    else:
        # v5e (no bf16 VPU/EUP): keep f32 elementwise path.
        p = jnp.exp(s - m_new)                                 # (tq, tk) f32
        p_sum = jnp.sum(p, axis=-1, keepdims=True)
        p_mm = p.astype(v.dtype)

    l_sc[...] = alpha * l_sc[...] + p_sum
    acc_sc[...] = alpha * acc_sc[...] + jnp.dot(
        p_mm, v, preferred_element_type=jnp.float32)
    m_sc[...] = m_new

    @pl.when(ki == pl.num_programs(3) - 1)
    def _():
        inv_l = pl.reciprocal(l_sc[...], approx=False)         # exact (review)
        o_ref[0, 0] = (acc_sc[...] * inv_l).astype(o_ref.dtype)


def _out_proj_kernel(a_ref, w_ref, b_ref, o_ref, acc_ref):
    """to_out: reduce over the head grid axis (axis 3)."""
    h = pl.program_id(3)

    @pl.when(h == 0)
    def _():
        acc_ref[...] = jnp.zeros(acc_ref.shape, jnp.float32)

    acc_ref[...] += jnp.dot(a_ref[0, 0], w_ref[...],
                            preferred_element_type=jnp.float32)

    @pl.when(h == pl.num_programs(3) - 1)
    def _():
        o_ref[0] = (acc_ref[...] + b_ref[...].astype(jnp.float32)
                    ).astype(o_ref.dtype)


# ------------------------------- wrappers ---------------------------------- #

def proj_heads_pallas(x, weights, *, tm_desired=512):
    """Fused per-head projections.

    x: (B, N, Din); weights: list of (H, Din, d).
    Returns list of (B, H, N, d) arrays in x.dtype (head-major, no transposes).
    """
    B, N, Din = x.shape
    H, Dw, d = weights[0].shape
    assert Dw == Din
    n = len(weights)
    tm = _tile(N, tm_desired, 8)
    grid = (B, N // tm)

    in_specs = [pl.BlockSpec((1, tm, Din), lambda b, i: (b, i, 0))]
    in_specs += [pl.BlockSpec((H, Din, d), lambda b, i: (0, 0, 0))
                 for _ in range(n)]
    out_specs = [pl.BlockSpec((1, H, tm, d), lambda b, i: (b, 0, i, 0))
                 for _ in range(n)]
    out_shape = [jax.ShapeDtypeStruct((B, H, N, d), x.dtype) for _ in range(n)]

    outs = pl.pallas_call(
        _proj_heads_kernel,
        out_shape=out_shape,
        grid_spec=pltpu.PrefetchScalarGridSpec(
            num_scalar_prefetch=0, grid=grid,
            in_specs=in_specs, out_specs=out_specs),
        compiler_params=pltpu.CompilerParams(
            dimension_semantics=("parallel", "parallel"),
            vmem_limit_bytes=_VMEM_LIMIT_BYTES),
    )(x, *weights)
    return list(outs) if isinstance(outs, (list, tuple)) else [outs]


def flash_attention_pallas(q, k, v, *, bf16_softmax, tq_desired=512, tk_desired=512):
    """softmax(q k^T) v (scale pre-folded into q), flash-style online softmax.

    q: (B, H, Nq, d), k/v: (B, H, Nk, d).  Returns (B, H, Nq, d) in q.dtype.
    """
    B, H, Nq, d = q.shape
    _, _, Nk, _ = k.shape
    tq = _tile(Nq, tq_desired, 8)
    tk = _tile(Nk, tk_desired, 8)
    grid = (B, H, Nq // tq, Nk // tk)
    kern = functools.partial(_flash_attn_kernel, bf16_softmax=bf16_softmax)

    grid_spec = pltpu.PrefetchScalarGridSpec(
        num_scalar_prefetch=0, grid=grid,
        in_specs=[pl.BlockSpec((1, 1, tq, d), lambda b, h, qi, ki: (b, h, qi, 0)),
                  pl.BlockSpec((1, 1, tk, d), lambda b, h, qi, ki: (b, h, ki, 0)),
                  pl.BlockSpec((1, 1, tk, d), lambda b, h, qi, ki: (b, h, ki, 0))],
        out_specs=pl.BlockSpec((1, 1, tq, d), lambda b, h, qi, ki: (b, h, qi, 0)),
        scratch_shapes=[pltpu.VMEM((tq, 1), jnp.float32),   # running max
                        pltpu.VMEM((tq, 1), jnp.float32),   # running denom
                        pltpu.VMEM((tq, d), jnp.float32)])  # output accumulator
    return pl.pallas_call(
        kern,
        out_shape=jax.ShapeDtypeStruct((B, H, Nq, d), q.dtype),
        grid_spec=grid_spec,
        compiler_params=pltpu.CompilerParams(
            dimension_semantics=("parallel", "parallel", "parallel", "arbitrary"),
            vmem_limit_bytes=_VMEM_LIMIT_BYTES),
    )(q, k, v)


def out_proj_pallas(a, w, b, out_dtype, *, tm_desired=512, tn_desired=512):
    """to_out projection consuming head-major attention output.

    a: (B, H, N, d), w: (H*d, Dq) [pre-transposed], b: (Dq,).  Returns (B, N, Dq).
    Heads are the K-reduction grid axis (no head-merge transpose needed).
    """
    B, H, N, d = a.shape
    inner, Dq = w.shape
    assert inner == H * d
    tm = _tile(N, tm_desired, 8)
    tn = _tile(Dq, tn_desired, 128)
    grid = (B, N // tm, Dq // tn, H)

    grid_spec = pltpu.PrefetchScalarGridSpec(
        num_scalar_prefetch=0, grid=grid,
        in_specs=[pl.BlockSpec((1, 1, tm, d), lambda bi, i, j, h: (bi, h, i, 0)),
                  pl.BlockSpec((d, tn), lambda bi, i, j, h: (h, j)),
                  pl.BlockSpec((1, tn), lambda bi, i, j, h: (0, j))],
        out_specs=pl.BlockSpec((1, tm, tn), lambda bi, i, j, h: (bi, i, j)),
        scratch_shapes=[pltpu.VMEM((tm, tn), jnp.float32)])
    return pl.pallas_call(
        _out_proj_kernel,
        out_shape=jax.ShapeDtypeStruct((B, N, Dq), out_dtype),
        grid_spec=grid_spec,
        compiler_params=pltpu.CompilerParams(
            dimension_semantics=("parallel", "parallel", "parallel", "arbitrary"),
            vmem_limit_bytes=_VMEM_LIMIT_BYTES),
    )(a, w, b.reshape(1, Dq))


# --------------------------- CrossAttention module -------------------------- #

class CrossAttentionPallas:
    def __init__(self, query_dim, context_dim=None, heads=8, dim_head=64,
                 dropout=0.0, key=None, param_dtype=jnp.bfloat16):
        inner_dim = dim_head * heads
        context_dim = query_dim if context_dim is None else context_dim
        self.scale = dim_head ** (-0.5)
        self.heads = heads
        self.dim_head = dim_head
        self.inner_dim = inner_dim
        self.query_dim = query_dim
        self.context_dim = context_dim
        self.param_dtype = param_dtype
        # dropout = 0.0 (eval mode) -> identity

        key = jax.random.PRNGKey(0) if key is None else key
        kq, kk, kv, ko, kb = jax.random.split(key, 5)

        def init_w(k, fan_in, fan_out):
            # torch nn.Linear default: U(-1/sqrt(fan_in), 1/sqrt(fan_in)),
            # stored PRE-TRANSPOSED as (in, out) so y = x @ w == x @ W.T.
            bound = 1.0 / math.sqrt(fan_in)
            return jax.random.uniform(k, (fan_in, fan_out), jnp.float32, -bound, bound)

        self.w_q = init_w(kq, query_dim, inner_dim)
        self.w_k = init_w(kk, context_dim, inner_dim)
        self.w_v = init_w(kv, context_dim, inner_dim)
        self.w_out = init_w(ko, inner_dim, query_dim)
        bound_o = 1.0 / math.sqrt(inner_dim)
        self.b_out = jax.random.uniform(kb, (query_dim,), jnp.float32,
                                        -bound_o, bound_o)

        def to_heads(w):  # (Din, H*d) -> (H, Din, d)   (init-time only, free)
            din = w.shape[0]
            return jnp.transpose(w.reshape(din, heads, dim_head), (1, 0, 2))

        pd = param_dtype
        # Attention scale folded into the Q projection weight (review item).
        self.wq_h = to_heads(self.w_q * self.scale).astype(pd)   # (H, q_dim, d)
        self.wk_h = to_heads(self.w_k).astype(pd)                # (H, ctx_dim, d)
        self.wv_h = to_heads(self.w_v).astype(pd)                # (H, ctx_dim, d)
        self.w_out_k = self.w_out.astype(pd)                     # (inner, q_dim)
        self.b_out_k = self.b_out                                # f32 (added in f32)

        # bf16 elementwise softmax only where the chip supports it (v6e/v7x).
        self._bf16_softmax = (pd == jnp.bfloat16) and _HAS_BF16_VPU

    def __call__(self, x, context=None, mask=None):
        assert mask is None  # TODO(synk): boolean-mask masked_fill path not implemented
        B, Nq, Dq = x.shape
        out_dtype = x.dtype
        xk = x.astype(self.param_dtype)

        if context is None:
            # Self-attention: fused Q|K|V projection (x streamed once).
            q, k, v = proj_heads_pallas(xk, [self.wq_h, self.wk_h, self.wv_h])
        else:
            ck = context.astype(self.param_dtype)
            (q,) = proj_heads_pallas(xk, [self.wq_h])
            k, v = proj_heads_pallas(ck, [self.wk_h, self.wv_h])   # fused K|V

        o = flash_attention_pallas(q, k, v, bf16_softmax=self._bf16_softmax)
        out = out_proj_pallas(o, self.w_out_k, self.b_out_k, out_dtype)
        return out

    # Pure-jnp f32 reference (uses the dequantized kernel weights so the
    # comparison isolates activation-dtype / kernel error).
    def reference(self, x, context=None):
        context = x if context is None else context
        wq = self.wq_h.astype(jnp.float32)     # scale already folded
        wk = self.wk_h.astype(jnp.float32)
        wv = self.wv_h.astype(jnp.float32)
        q = jnp.einsum('bnk,hkd->bhnd', x, wq)
        k = jnp.einsum('bmk,hkd->bhmd', context, wk)
        v = jnp.einsum('bmk,hkd->bhmd', context, wv)
        sim = jnp.einsum('bhnd,bhmd->bhnm', q, k)
        attn = jax.nn.softmax(sim, axis=-1)
        o = jnp.einsum('bhnm,bhmd->bhnd', attn, v)
        B, Nq = x.shape[0], x.shape[1]
        o = jnp.transpose(o, (0, 2, 1, 3)).reshape(B, Nq, self.inner_dim)
        return o @ self.w_out_k.astype(jnp.float32) + self.b_out


# ---------------------------------- main ----------------------------------- #

if __name__ == "__main__":
    key = jax.random.PRNGKey(0)
    kx, kc, kp = jax.random.split(key, 3)

    batch, n_q, n_ctx = 2, 16, 8
    query_dim, context_dim = 32, 48
    heads, dim_head = 4, 8

    x = jax.random.normal(kx, (batch, n_q, query_dim), jnp.float32)
    context = jax.random.normal(kc, (batch, n_ctx, context_dim), jnp.float32)

    # Cross-attention path.
    module = CrossAttentionPallas(query_dim, context_dim=context_dim,
                                  heads=heads, dim_head=dim_head, key=kp)
    out = jax.block_until_ready(module(x, context))
    ref = module.reference(x, context)
    assert out.shape == (batch, n_q, query_dim)
    # Tolerance covers bf16 activations/weights along the kernel path.
    assert jnp.allclose(out, ref, atol=3e-2, rtol=3e-2), \
        f"max abs err {jnp.max(jnp.abs(out - ref))}"

    # Self-attention path (context=None) -> fused QKV projection.
    module_self = CrossAttentionPallas(query_dim, heads=heads,
                                       dim_head=dim_head, key=kp)
    out_self = jax.block_until_ready(module_self(x))
    ref_self = module_self.reference(x)
    assert out_self.shape == (batch, n_q, query_dim)
    assert jnp.allclose(out_self, ref_self, atol=3e-2, rtol=3e-2), \
        f"max abs err {jnp.max(jnp.abs(out_self - ref_self))}"

    print("KERNEL_OK")
</pallas_src>

<mosaic_0001>
module attributes {stable_mosaic.version = 11 : i64} {
  func.func @_proj_heads_kernel(%arg0: i32, %arg1: i32, %arg2: memref<1x16x32xbf16, #tpu.memory_space<vmem>>, %arg3: memref<4x32x8xbf16, #tpu.memory_space<vmem>>, %arg4: memref<1x4x16x8xbf16, #tpu.memory_space<vmem>>) attributes {dimension_semantics = [#tpu.dimension_semantics<parallel>, #tpu.dimension_semantics<parallel>], iteration_bounds = array<i64: 2, 1>, scalar_prefetch = 0 : i64, scratch_operands = 0 : i64, tpu.core_type = #tpu.core_type<tc>, window_params = [{transform_indices = @transform_0, window_bounds = array<i64: 1, 16, 32>}, {pipeline_mode = #tpu.pipeline_mode<synchronous>, transform_indices = @transform_1, window_bounds = array<i64: 4, 32, 8>}, {transform_indices = @transform_2, window_bounds = array<i64: 1, 4, 16, 8>}]} {
    %c0 = arith.constant 0 : index
    %c0_0 = arith.constant 0 : index
    %c0_1 = arith.constant 0 : index
    %0 = vector.load %arg2[%c0, %c0_0, %c0_1] : memref<1x16x32xbf16, #tpu.memory_space<vmem>>, vector<1x16x32xbf16>
    %1 = vector.shape_cast %0 : vector<1x16x32xbf16> to vector<16x32xbf16>
    %c0_2 = arith.constant 0 : index
    %c0_3 = arith.constant 0 : index
    %c0_4 = arith.constant 0 : index
    %2 = vector.load %arg3[%c0_2, %c0_3, %c0_4] : memref<4x32x8xbf16, #tpu.memory_space<vmem>>, vector<1x32x8xbf16>
    %3 = vector.shape_cast %2 : vector<1x32x8xbf16> to vector<32x8xbf16>
    %cst = arith.constant dense<0.000000e+00> : vector<16x8xf32>
    %4 = tpu.matmul %1, %3, %cst {dimension_numbers = #tpu.dot_dimension_numbers<[1], [0], [0], [1], [0, 0, 1, 1], [], []>} : vector<16x32xbf16>, vector<32x8xbf16>, vector<16x8xf32> -> vector<16x8xf32>
    %5 = arith.truncf %4 : vector<16x8xf32> to vector<16x8xbf16>
    %c0_5 = arith.constant 0 : index
    %c0_6 = arith.constant 0 : index
    %c0_7 = arith.constant 0 : index
    %c0_8 = arith.constant 0 : index
    %6 = vector.load %arg4[%c0_5, %c0_6, %c0_7, %c0_8] : memref<1x4x16x8xbf16, #tpu.memory_space<vmem>>, vector<1x1x16x8xbf16>
    %7 = vector.shape_cast %6 : vector<1x1x16x8xbf16> to vector<16x8xbf16>
    %8 = vector.shape_cast %5 : vector<16x8xbf16> to vector<1x1x16x8xbf16>
    tpu.vector_store %arg4[%c0_5, %c0_6, %c0_7, %c0_8], %8 {strides = array<i32>} : memref<1x4x16x8xbf16, #tpu.memory_space<vmem>>, vector<1x1x16x8xbf16>,
    %c1 = arith.constant 1 : index
    %c0_9 = arith.constant 0 : index
    %c0_10 = arith.constant 0 : index
    %9 = vector.load %arg3[%c1, %c0_9, %c0_10] : memref<4x32x8xbf16, #tpu.memory_space<vmem>>, vector<1x32x8xbf16>
    %10 = vector.shape_cast %9 : vector<1x32x8xbf16> to vector<32x8xbf16>
    %cst_11 = arith.constant dense<0.000000e+00> : vector<16x8xf32>
    %11 = tpu.matmul %1, %10, %cst_11 {dimension_numbers = #tpu.dot_dimension_numbers<[1], [0], [0], [1], [0, 0, 1, 1], [], []>} : vector<16x32xbf16>, vector<32x8xbf16>, vector<16x8xf32> -> vector<16x8xf32>
    %12 = arith.truncf %11 : vector<16x8xf32> to vector<16x8xbf16>
    %c0_12 = arith.constant 0 : index
    %c1_13 = arith.constant 1 : index
    %c0_14 = arith.constant 0 : index
    %c0_15 = arith.constant 0 : index
    %13 = vector.load %arg4[%c0_12, %c1_13, %c0_14, %c0_15] : memref<1x4x16x8xbf16, #tpu.memory_space<vmem>>, vector<1x1x16x8xbf16>
    %14 = vector.shape_cast %13 : vector<1x1x16x8xbf16> to vector<16x8xbf16>
    %15 = vector.shape_cast %12 : vector<16x8xbf16> to vector<1x1x16x8xbf16>
    tpu.vector_store %arg4[%c0_12, %c1_13, %c0_14, %c0_15], %15 {strides = array<i32>} : memref<1x4x16x8xbf16, #tpu.memory_space<vmem>>, vector<1x1x16x8xbf16>,
    %c2 = arith.constant 2 : index
    %c0_16 = arith.constant 0 : index
    %c0_17 = arith.constant 0 : index
    %16 = vector.load %arg3[%c2, %c0_16, %c0_17] : memref<4x32x8xbf16, #tpu.memory_space<vmem>>, vector<1x32x8xbf16>
    %17 = vector.shape_cast %16 : vector<1x32x8xbf16> to vector<32x8xbf16>
    %cst_18 = arith.constant dense<0.000000e+00> : vector<16x8xf32>
    %18 = tpu.matmul %1, %17, %cst_18 {dimension_numbers = #tpu.dot_dimension_numbers<[1], [0], [0], [1], [0, 0, 1, 1], [], []>} : vector<16x32xbf16>, vector<32x8xbf16>, vector<16x8xf32> -> vector<16x8xf32>
    %19 = arith.truncf %18 : vector<16x8xf32> to vector<16x8xbf16>
    %c0_19 = arith.constant 0 : index
    %c2_20 = arith.constant 2 : index
    %c0_21 = arith.constant 0 : index
    %c0_22 = arith.constant 0 : index
    %20 = vector.load %arg4[%c0_19, %c2_20, %c0_21, %c0_22] : memref<1x4x16x8xbf16, #tpu.memory_space<vmem>>, vector<1x1x16x8xbf16>
    %21 = vector.shape_cast %20 : vector<1x1x16x8xbf16> to vector<16x8xbf16>
    %22 = vector.shape_cast %19 : vector<16x8xbf16> to vector<1x1x16x8xbf16>
    tpu.vector_store %arg4[%c0_19, %c2_20, %c0_21, %c0_22], %22 {strides = array<i32>} : memref<1x4x16x8xbf16, #tpu.memory_space<vmem>>, vector<1x1x16x8xbf16>,
    %c3 = arith.constant 3 : index
    %c0_23 = arith.constant 0 : index
    %c0_24 = arith.constant 0 : index
    %23 = vector.load %arg3[%c3, %c0_23, %c0_24] : memref<4x32x8xbf16, #tpu.memory_space<vmem>>, vector<1x32x8xbf16>
    %24 = vector.shape_cast %23 : vector<1x32x8xbf16> to vector<32x8xbf16>
    %cst_25 = arith.constant dense<0.000000e+00> : vector<16x8xf32>
    %25 = tpu.matmul %1, %24, %cst_25 {dimension_numbers = #tpu.dot_dimension_numbers<[1], [0], [0], [1], [0, 0, 1, 1], [], []>} : vector<16x32xbf16>, vector<32x8xbf16>, vector<16x8xf32> -> vector<16x8xf32>
    %26 = arith.truncf %25 : vector<16x8xf32> to vector<16x8xbf16>
    %c0_26 = arith.constant 0 : index
    %c3_27 = arith.constant 3 : index
    %c0_28 = arith.constant 0 : index
    %c0_29 = arith.constant 0 : index
    %27 = vector.load %arg4[%c0_26, %c3_27, %c0_28, %c0_29] : memref<1x4x16x8xbf16, #tpu.memory_space<vmem>>, vector<1x1x16x8xbf16>
    %28 = vector.shape_cast %27 : vector<1x1x16x8xbf16> to vector<16x8xbf16>
    %29 = vector.shape_cast %26 : vector<16x8xbf16> to vector<1x1x16x8xbf16>
    tpu.vector_store %arg4[%c0_26, %c3_27, %c0_28, %c0_29], %29 {strides = array<i32>} : memref<1x4x16x8xbf16, #tpu.memory_space<vmem>>, vector<1x1x16x8xbf16>,
    return
  }
  func.func @transform_0(%arg0: i32, %arg1: i32) -> (i32, i32, i32) {
    %c0_i32 = arith.constant 0 : i32
    %c0_i32_0 = arith.constant 0 : i32
    return %arg0, %arg1, %c0_i32 : i32, i32, i32
  }
  func.func @transform_1(%arg0: i32, %arg1: i32) -> (i32, i32, i32) {
    %c0_i32 = arith.constant 0 : i32
    %c0_i32_0 = arith.constant 0 : i32
    %c0_i32_1 = arith.constant 0 : i32
    %c0_i32_2 = arith.constant 0 : i32
    return %c0_i32, %c0_i32_0, %c0_i32_1 : i32, i32, i32
  }
  func.func @transform_2(%arg0: i32, %arg1: i32) -> (i32, i32, i32, i32) {
    %c0_i32 = arith.constant 0 : i32
    %c0_i32_0 = arith.constant 0 : i32
    %c0_i32_1 = arith.constant 0 : i32
    return %arg0, %c0_i32, %arg1, %c0_i32_0 : i32, i32, i32, i32
  }
}

</mosaic_0001>

<bundles_post_ra>
// kernel: tpu_custom_call.1
= control target key start
LH: loop header
LB: loop body
LE: loop exit
PB: predicated region body
PF: predicated region fallthrough
CT: control target
= control target key end

     0   :  { %s737_s9 = smov 0   ;;  %s739_s10 = smov 0   ;;  %s820_s0 = inlined_call_operand.vmem [shape: bf16[2,16,32], index: 0, kind: input, shape index: {}]   ;;  %s821_s1 = inlined_call_operand.vmem [shape: bf16[4,32,8], index: 1, kind: input, shape index: {}]   ;;  %s822_s2 = inlined_call_operand.vmem [shape: bf16[2,4,16,8], index: 2, kind: output, shape index: {}]  }
   0x1   :  { %s741_s11 = smov 0  }
   0x2 LB: > { %s24_s12 = sadd.s32 1, %s714_s10  ;;  %p561_p0 = scmp.ge.s32.totalorder %s718_s11, 1  ;;  %s718_s11 = sphi %s741_s11, %s12_s11   ;;  %s714_s10 = sphi %s739_s10, %s824_s10   ;;  %s710_s9 = sphi %s737_s9, %s823_s9  }
   0x3   : > { %p26_p1 = scmp.ge.s32.totalorder %s24_s12, 2  ;;  %p133_p2 = scmp.lt.s32.totalorder %s718_s11, 3 }
   0x5   : > { %s826_s12 = smov (%p26_p1, %s24_s12), 0  ;;  %p134_p3 = pnand %p561_p0, %p133_p2 }
   0x6   : > { %p164_p4 = scmp.lt.s32.totalorder (!%p134_p3), %s710_s9, 1 }
   0x7   : > { %137 = sbr.rel (%p134_p3) target bundleno = 230 (0xe6), region = 28 }
   0xc   : > { %v687_v0 = vld [vmem:[%s821_s1 + $0x8] sm:$0xff]   ;;  %v720_v1 = vmov 0.0   ;;  %v688_v2 = vld [vmem:[%s821_s1 + $0x18] sm:$0xff]   ;;  %v689_v3 = vld [vmem:[%s821_s1] sm:$0xff]   ;;  %vm721_vm0 = vmmov 0   ;;  %s828_s9 = smov (!%p164_p4, %s710_s9), 1 }
   0xd   : > { %629 = vmatprep.subr.bf16.mxu0 %v720_v1  ;;  %637 = vmatprep.subr.bf16.mxu1 %v720_v1  ;;  %v690_v4 = vld [vmem:[%s821_s1 + $0x10] sm:$0xff]   ;;  %s607_s21 = sshll.u32 %s828_s9, 3  ;;  %v692_v5 = vld [vmem:[%s821_s1 + $0x28] sm:$0xff]   ;;  %vm207_vm1 = vcmask 261120   ;;  %v693_v6 = vld [vmem:[%s821_s1 + $0x38] sm:$0xff]   ;;  %s608_s5 = sshll.u32 %s828_s9, 5 }
   0xe   : > { %630 = vmatpush3.bf16.msra.mxu0 %v687_v0  ;;  %633 = vmatprep.mubr.msk.bf16.mxu0 %vm721_vm0, %v720_v1  ;;  %s171_s26 = scalar_lea.vmem %s820_s0, %s607_s21  ;;  %v694_v8 = vld [vmem:[%s821_s1 + $0x20] sm:$0xff]   ;;  %v695_v9 = vld [vmem:[%s821_s1 + $0x30] sm:$0xff]   ;;  %s793_s8 = scalar_lea.vmem %s822_s2, %s608_s5  ;;  %vm260_vm2 = vcmask 60416  }
   0xf   : > { %638 = vmatpush3.bf16.msra.mxu1 %v688_v2  ;;  %631 = vmatprep.subr.bf16.mxu0 %v720_v1  ;;  %v691_v7 = vld [vmem:[%s171_s26] sm:$0xff]  }
  0x10   : > { %639 = vmatprep.subr.bf16.mxu1 %v720_v1  ;;  %641 = vmatprep.mubr.msk.bf16.mxu1 %vm721_vm0, %v720_v1 }
  0x12   : > { %632 = vmatpush3.bf16.msra.mxu0 %v689_v3 }
  0x13   : > { %640 = vmatpush3.bf16.msra.mxu1 %v690_v4  ;;  %645 = vmatprep.subr.bf16.mxu0 %v720_v1 }
  0x14   : > { %653 = vmatprep.subr.bf16.mxu1 %v720_v1 }
  0x15   : > { %634 = vmatmul.mubr.msk.bf16.vlgmr.msra.gmra.mxu0 %vm207_vm1, %v691_v7 }
  0x16   : > { %642 = vmatmul.mubr.msk.bf16.vlgmr.msra.gmra.mxu1 %vm207_vm1, %v691_v7  ;;  %646 = vmatpush3.bf16.msra.mxu0 %v692_v5 }
  0x17   : > { %654 = vmatpush3.bf16.msra.mxu1 %v693_v6  ;;  %647 = vmatprep.subr.bf16.mxu0 %v720_v1 }
  0x18   : > { %655 = vmatprep.subr.bf16.mxu1 %v720_v1  ;;  %649 = vmatprep.mubr.msk.bf16.mxu0 %vm721_vm0, %v720_v1 }
  0x19   : > { %657 = vmatprep.mubr.msk.bf16.mxu1 %vm721_vm0, %v720_v1 }
  0x1a   : > { %648 = vmatpush3.bf16.msra.mxu0 %v694_v8 }
  0x1b   : > { %656 = vmatpush3.bf16.msra.mxu1 %v695_v9 }
  0x1d   : > { %650 = vmatmul.mubr.msk.bf16.vlgmr.msra.gmra.mxu0 %vm207_vm1, %v691_v7 }
  0x1e   : > { %658 = vmatmul.mubr.msk.bf16.vlgmr.msra.gmra.mxu1 %vm207_vm1, %v691_v7 }
  0xd5   : > { %v245_v10 = vpop.f32.mrf.mxu0 }
  0xd6   : > { %v314_v11 = vpop.f32.mrf.mxu1  ;;  %v609_v12 = vpack.c.bf16 %v245_v10, %v245_v10 }
  0xd7   : > { %v611_v13 = vpack.c.bf16 %v314_v11, %v314_v11  ;;  %v635_v14 = vpop.f32.mrf.mxu0 }
  0xd8   : > { %v643_v15 = vpop.f32.mrf.mxu1  ;;  %261 = vst.msk [vmem:[%s793_s8] sm:$0xf] %vm260_vm2, %v609_v12 }
  0xd9   : > { %581 = vst.msk [vmem:[%s793_s8 + $0x8] sm:$0xf] %vm260_vm2, %v611_v13  ;;  %v248_v16 = vpop.f32.mrf.mxu0 }
  0xda   : > { %v317_v17 = vpop.f32.mrf.mxu1  ;;  %v610_v18 = vpack.c.bf16 %v248_v16, %v248_v16 }
  0xdb   : > { %v612_v19 = vpack.c.bf16 %v317_v17, %v317_v17  ;;  %v636_v20 = vpop.f32.mrf.mxu0 }
  0xdc   : > { %v644_v21 = vpop.f32.mrf.mxu1  ;;  %262 = vst.msk [vmem:[%s793_s8 + $0x4] sm:$0xf] %vm260_vm2, %v610_v18 }
  0xdd   : > { %582 = vst.msk [vmem:[%s793_s8 + $0xc] sm:$0xf] %vm260_vm2, %v612_v19  ;;  %v383_v22 = vpop.f32.mrf.mxu0 }
  0xde   : > { %v452_v23 = vpop.f32.mrf.mxu1  ;;  %v613_v24 = vpack.c.bf16 %v383_v22, %v383_v22 }
  0xdf   : > { %v615_v25 = vpack.c.bf16 %v452_v23, %v452_v23  ;;  %v651_v26 = vpop.f32.mrf.mxu0 }
  0xe0   : > { %v659_v27 = vpop.f32.mrf.mxu1  ;;  %592 = vst.msk [vmem:[%s793_s8 + $0x10] sm:$0xf] %vm260_vm2, %v613_v24 }
  0xe1   : > { %603 = vst.msk [vmem:[%s793_s8 + $0x18] sm:$0xf] %vm260_vm2, %v615_v25  ;;  %v386_v28 = vpop.f32.mrf.mxu0 }
  0xe2   : > { %v455_v29 = vpop.f32.mrf.mxu1  ;;  %v614_v30 = vpack.c.bf16 %v386_v28, %v386_v28 }
  0xe3   : > { %v616_v31 = vpack.c.bf16 %v455_v29, %v455_v29  ;;  %v652_v32 = vpop.f32.mrf.mxu0 }
  0xe4   : > { %v660_v33 = vpop.f32.mrf.mxu1  ;;  %593 = vst.msk [vmem:[%s793_s8 + $0x14] sm:$0xf] %vm260_vm2, %v614_v30 }
  0xe5   : > { %604 = vst.msk [vmem:[%s793_s8 + $0x1c] sm:$0xf] %vm260_vm2, %v616_v31 }
  0xe6 PF: > { %s12_s11 = sadd.s32 1, %s718_s11   ;;  %s823_s9 = smov %s714_s10 }
  0xe7   : > { %p9_p5 = scmp.ge.s32.totalorder %s12_s11, 4   ;;  %s824_s10 = smov %s826_s12 }
  0xe9   :  { %11 = sbr.rel (!%p9_p5) target bundleno = 2 (0x2), region = 64 }

</bundles_post_ra>
